<compile_context>
chip_gen: v6e
topology: v6e:2x2x1
jax: 0.10.0
libtpu: 0.0.40
codegen_flags: <defaults>
</compile_context>

<pallas_src>
import functools

import jax
import jax.numpy as jnp
from jax.experimental import pallas as pl
from jax.experimental.pallas import tpu as pltpu

_EPS = 1e-6        # torch.pairwise_distance default eps (added to the difference)
_MARGIN = 0.01     # hinge margin used by the reference forward
_OUT_LANES = 128   # lane-dense output block width


def _pml_kernel(a_ref, nm_ref, nu_ref,      # scalar-prefetch (SMEM): (B, T) int32 each
                m1_ref, m2_ref,             # VMEM blocks: (1, N1, D) / (1, N2, D)
                o_ref,                      # VMEM block:  (1, 1, 128) f32
                ga, gm, gu,                 # VMEM scratch: (T, D) f32 each
                *, inv_r):
    b = pl.program_id(0)
    T = ga.shape[0]

    # Gather the T anchor / matched / unmatched embedding rows for this batch
    # element into VMEM scratch (dynamic sublane loads addressed from SMEM).
    @pl.loop(0, T)
    def _(t):
        ga[pl.ds(t, 1), :] = m1_ref[0, pl.ds(a_ref[b, t], 1), :]
        gm[pl.ds(t, 1), :] = m2_ref[0, pl.ds(nm_ref[b, t], 1), :]
        gu[pl.ds(t, 1), :] = m2_ref[0, pl.ds(nu_ref[b, t], 1), :]

    # Vectorized pairwise-distance / hinge / reduction on full (T, D) tiles.
    va = ga[...]
    dm = va - gm[...] + _EPS
    du = va - gu[...] + _EPS
    dist_m = jnp.sqrt(jnp.sum(dm * dm, axis=1, keepdims=True))   # (T, 1)
    dist_u = jnp.sqrt(jnp.sum(du * du, axis=1, keepdims=True))   # (T, 1)
    per_t = jnp.maximum(_MARGIN - jnp.exp(-dist_m) + jnp.exp(-dist_u), 0.0)
    total = jnp.sum(per_t) * inv_r
    o_ref[...] = jnp.full(o_ref.shape, total, o_ref.dtype)


@functools.partial(jax.jit, static_argnames=("r_",))
def _pml_call(a_idx, nm_idx, nu_idx, m1, m2, r_):
    B, N1, D = m1.shape
    _, N2, _ = m2.shape
    T = a_idx.shape[1]

    kernel = functools.partial(_pml_kernel, inv_r=1.0 / float(r_))
    out = pl.pallas_call(
        kernel,
        out_shape=jax.ShapeDtypeStruct((B, 1, _OUT_LANES), jnp.float32),
        grid_spec=pltpu.PrefetchScalarGridSpec(
            num_scalar_prefetch=3,
            grid=(B,),
            in_specs=[
                # Full per-batch slices: last two block dims == full array dims.
                pl.BlockSpec((1, N1, D), lambda b, a, nm, nu: (b, 0, 0)),
                pl.BlockSpec((1, N2, D), lambda b, a, nm, nu: (b, 0, 0)),
            ],
            out_specs=pl.BlockSpec((1, 1, _OUT_LANES),
                                   lambda b, a, nm, nu: (b, 0, 0)),
            scratch_shapes=[
                pltpu.VMEM((T, D), jnp.float32),
                pltpu.VMEM((T, D), jnp.float32),
                pltpu.VMEM((T, D), jnp.float32),
            ],
        ),
        compiler_params=pltpu.CompilerParams(
            dimension_semantics=("parallel",),
        ),
    )(a_idx, nm_idx, nu_idx, m1, m2)
    return out[:, 0, 0]


def point_matching_loss(tuples, m1, m2, r_=10.0, batch_size=32):
    """Pallas implementation of point_matching_loss.forward.

    tuples : nested list where tuples[b][t] = (anchor_idx, matched_idx,
             unmatched_idx), or an int array of shape (B, T, 3).
    m1     : (B, N1, D) anchor embedding table.
    m2     : (B, N2, D) neighbour embedding table.
    Returns (B,) float32 per-batch loss (= torch output).
    """
    del batch_size  # stored by the PyTorch module but unused in forward
    idx = jnp.asarray(tuples, jnp.int32)          # (B, T, 3) host-side unpack
    m1 = jnp.asarray(m1, jnp.float32)
    m2 = jnp.asarray(m2, jnp.float32)
    B = m1.shape[0]
    if idx.size == 0:
        return jnp.zeros((B,), jnp.float32)
    a_idx = idx[..., 0]
    nm_idx = idx[..., 1]
    nu_idx = idx[..., 2]
    return _pml_call(a_idx, nm_idx, nu_idx, m1, m2, float(r_))


def _reference(idx, m1, m2, r_):
    """Pure-JAX mirror of the PyTorch forward (for verification)."""
    a, nm, nu = idx[..., 0], idx[..., 1], idx[..., 2]
    batch = jnp.arange(m1.shape[0])[:, None]
    m_a_v = m1[batch, a, :]
    m_n_m_v = m2[batch, nm, :]
    m_n_um_v = m2[batch, nu, :]
    dist_m = jnp.sqrt(jnp.sum((m_a_v - m_n_m_v + _EPS) ** 2, axis=-1))
    dist_u = jnp.sqrt(jnp.sum((m_a_v - m_n_um_v + _EPS) ** 2, axis=-1))
    loss = jnp.maximum(_MARGIN - jnp.exp(-dist_m) + jnp.exp(-dist_u), 0.0)
    return jnp.sum(loss, axis=1) / r_


if __name__ == "__main__":
    key = jax.random.PRNGKey(0)
    B, T, N1, N2, D = 2, 8, 16, 16, 32
    r_ = 10.0

    k1, k2, k3, k4, k5 = jax.random.split(key, 5)
    m1 = jax.random.normal(k1, (B, N1, D), jnp.float32)
    m2 = jax.random.normal(k2, (B, N2, D), jnp.float32)
    a_idx = jax.random.randint(k3, (B, T), 0, N1)
    nm_idx = jax.random.randint(k4, (B, T), 0, N2)
    nu_idx = jax.random.randint(k5, (B, T), 0, N2)

    # Build the nested-list `tuples` structure the PyTorch module expects.
    tuples = [[(int(a_idx[b, t]), int(nm_idx[b, t]), int(nu_idx[b, t]))
               for t in range(T)] for b in range(B)]

    out = point_matching_loss(tuples, m1, m2, r_=r_, batch_size=32)
    out = jax.block_until_ready(out)

    ref = _reference(jnp.asarray(tuples, jnp.int32), m1, m2, r_)
    assert out.shape == (B,), (out.shape, B)
    assert jnp.allclose(out, ref, rtol=1e-5, atol=1e-6), (out, ref)

    print("KERNEL_OK")
</pallas_src>

<mosaic_0001>
module attributes {stable_mosaic.version = 11 : i64} {
  func.func @_pml_kernel(%arg0: i32, %arg1: memref<2x8xi32, #tpu.memory_space<smem>>, %arg2: memref<2x8xi32, #tpu.memory_space<smem>>, %arg3: memref<2x8xi32, #tpu.memory_space<smem>>, %arg4: memref<1x16x32xf32, #tpu.memory_space<vmem>>, %arg5: memref<1x16x32xf32, #tpu.memory_space<vmem>>, %arg6: memref<1x1x128xf32, #tpu.memory_space<vmem>>, %arg7: memref<8x32xf32, #tpu.memory_space<vmem>>, %arg8: memref<8x32xf32, #tpu.memory_space<vmem>>, %arg9: memref<8x32xf32, #tpu.memory_space<vmem>>) attributes {dimension_semantics = [#tpu.dimension_semantics<parallel>], iteration_bounds = array<i64: 2>, scalar_prefetch = 3 : i64, scratch_operands = 3 : i64, tpu.core_type = #tpu.core_type<tc>, window_params = [{transform_indices = @transform_0, window_bounds = array<i64: 1, 16, 32>}, {transform_indices = @transform_1, window_bounds = array<i64: 1, 16, 32>}, {transform_indices = @transform_2, window_bounds = array<i64: 1, 1, 128>}]} {
    %c0_i32 = arith.constant 0 : i32
    %c8_i32 = arith.constant 8 : i32
    %0 = arith.addi %c0_i32, %c8_i32 : i32
    %c1_i32 = arith.constant 1 : i32
    scf.for %arg10 = %c0_i32 to %0 step %c1_i32  : i32 {
      %c1_i32_18 = arith.constant 1 : i32
      %36 = arith.muli %arg10, %c1_i32_18 : i32
      %c0_i32_19 = arith.constant 0 : i32
      %37 = arith.addi %c0_i32_19, %36 : i32
      %38 = arith.index_cast %arg0 : i32 to index
      %39 = arith.index_cast %37 : i32 to index
      %40 = memref.load %arg1[%38, %39] : memref<2x8xi32, #tpu.memory_space<smem>>
      %c0_20 = arith.constant 0 : index
      %41 = arith.index_cast %40 : i32 to index
      %c0_21 = arith.constant 0 : index
      %42 = vector.load %arg4[%c0_20, %41, %c0_21] : memref<1x16x32xf32, #tpu.memory_space<vmem>>, vector<1x1x32xf32>
      %43 = vector.shape_cast %42 : vector<1x1x32xf32> to vector<1x32xf32>
      %44 = arith.index_cast %37 : i32 to index
      %c0_22 = arith.constant 0 : index
      %45 = vector.load %arg7[%44, %c0_22] : memref<8x32xf32, #tpu.memory_space<vmem>>, vector<1x32xf32>
      tpu.vector_store %arg7[%44, %c0_22], %43 {strides = array<i32>} : memref<8x32xf32, #tpu.memory_space<vmem>>, vector<1x32xf32>,
      %46 = arith.index_cast %arg0 : i32 to index
      %47 = arith.index_cast %37 : i32 to index
      %48 = memref.load %arg2[%46, %47] : memref<2x8xi32, #tpu.memory_space<smem>>
      %c0_23 = arith.constant 0 : index
      %49 = arith.index_cast %48 : i32 to index
      %c0_24 = arith.constant 0 : index
      %50 = vector.load %arg5[%c0_23, %49, %c0_24] : memref<1x16x32xf32, #tpu.memory_space<vmem>>, vector<1x1x32xf32>
      %51 = vector.shape_cast %50 : vector<1x1x32xf32> to vector<1x32xf32>
      %52 = arith.index_cast %37 : i32 to index
      %c0_25 = arith.constant 0 : index
      %53 = vector.load %arg8[%52, %c0_25] : memref<8x32xf32, #tpu.memory_space<vmem>>, vector<1x32xf32>
      tpu.vector_store %arg8[%52, %c0_25], %51 {strides = array<i32>} : memref<8x32xf32, #tpu.memory_space<vmem>>, vector<1x32xf32>,
      %54 = arith.index_cast %arg0 : i32 to index
      %55 = arith.index_cast %37 : i32 to index
      %56 = memref.load %arg3[%54, %55] : memref<2x8xi32, #tpu.memory_space<smem>>
      %c0_26 = arith.constant 0 : index
      %57 = arith.index_cast %56 : i32 to index
      %c0_27 = arith.constant 0 : index
      %58 = vector.load %arg5[%c0_26, %57, %c0_27] : memref<1x16x32xf32, #tpu.memory_space<vmem>>, vector<1x1x32xf32>
      %59 = vector.shape_cast %58 : vector<1x1x32xf32> to vector<1x32xf32>
      %60 = arith.index_cast %37 : i32 to index
      %c0_28 = arith.constant 0 : index
      %61 = vector.load %arg9[%60, %c0_28] : memref<8x32xf32, #tpu.memory_space<vmem>>, vector<1x32xf32>
      tpu.vector_store %arg9[%60, %c0_28], %59 {strides = array<i32>} : memref<8x32xf32, #tpu.memory_space<vmem>>, vector<1x32xf32>,
    }
    %c8_i32_0 = arith.constant 8 : i32
    %c0 = arith.constant 0 : index
    %c0_1 = arith.constant 0 : index
    %1 = vector.load %arg7[%c0, %c0_1] : memref<8x32xf32, #tpu.memory_space<vmem>>, vector<8x32xf32>
    %c0_2 = arith.constant 0 : index
    %c0_3 = arith.constant 0 : index
    %2 = vector.load %arg8[%c0_2, %c0_3] : memref<8x32xf32, #tpu.memory_space<vmem>>, vector<8x32xf32>
    %3 = arith.subf %1, %2 : vector<8x32xf32>
    %cst = arith.constant 9.99999997E-7 : f32
    %4 = vector.broadcast %cst : f32 to vector<8x32xf32>
    %5 = arith.addf %3, %4 : vector<8x32xf32>
    %c0_4 = arith.constant 0 : index
    %c0_5 = arith.constant 0 : index
    %6 = vector.load %arg9[%c0_4, %c0_5] : memref<8x32xf32, #tpu.memory_space<vmem>>, vector<8x32xf32>
    %7 = arith.subf %1, %6 : vector<8x32xf32>
    %cst_6 = arith.constant 9.99999997E-7 : f32
    %8 = vector.broadcast %cst_6 : f32 to vector<8x32xf32>
    %9 = arith.addf %7, %8 : vector<8x32xf32>
    %10 = arith.mulf %5, %5 : vector<8x32xf32>
    %cst_7 = arith.constant dense<0.000000e+00> : vector<8xf32>
    %11 = vector.multi_reduction <add>, %10, %cst_7 [1] : vector<8x32xf32> to vector<8xf32>
    %12 = vector.shape_cast %11 : vector<8xf32> to vector<8x1xf32>
    %13 = math.sqrt %12 : vector<8x1xf32>
    %14 = arith.mulf %9, %9 : vector<8x32xf32>
    %cst_8 = arith.constant dense<0.000000e+00> : vector<8xf32>
    %15 = vector.multi_reduction <add>, %14, %cst_8 [1] : vector<8x32xf32> to vector<8xf32>
    %16 = vector.shape_cast %15 : vector<8xf32> to vector<8x1xf32>
    %17 = math.sqrt %16 : vector<8x1xf32>
    %cst_9 = arith.constant 0.000000e+00 : f32
    %18 = vector.broadcast %cst_9 : f32 to vector<8x1xf32>
    %19 = arith.subf %18, %13 : vector<8x1xf32>
    %20 = math.exp %19 : vector<8x1xf32>
    %cst_10 = arith.constant 0.00999999977 : f32
    %21 = vector.broadcast %cst_10 : f32 to vector<8x1xf32>
    %22 = arith.subf %21, %20 : vector<8x1xf32>
    %cst_11 = arith.constant 0.000000e+00 : f32
    %23 = vector.broadcast %cst_11 : f32 to vector<8x1xf32>
    %24 = arith.subf %23, %17 : vector<8x1xf32>
    %25 = math.exp %24 : vector<8x1xf32>
    %26 = arith.addf %22, %25 : vector<8x1xf32>
    %cst_12 = arith.constant 0.000000e+00 : f32
    %27 = vector.broadcast %cst_12 : f32 to vector<8x1xf32>
    %28 = arith.maximumf %26, %27 : vector<8x1xf32>
    %29 = vector.shape_cast %28 : vector<8x1xf32> to vector<1x8x1xf32>
    %cst_13 = arith.constant dense<0.000000e+00> : vector<1xf32>
    %30 = vector.multi_reduction <add>, %29, %cst_13 [1, 2] : vector<1x8x1xf32> to vector<1xf32>
    %31 = vector.shape_cast %30 : vector<1xf32> to vector<1x1x1xf32>
    %32 = vector.extract %31[0, 0, 0] : f32 from vector<1x1x1xf32>
    %cst_14 = arith.constant 1.000000e-01 : f32
    %33 = arith.mulf %32, %cst_14 : f32
    %34 = vector.broadcast %33 : f32 to vector<1x1x128xf32>
    %c0_15 = arith.constant 0 : index
    %c0_16 = arith.constant 0 : index
    %c0_17 = arith.constant 0 : index
    %35 = vector.load %arg6[%c0_15, %c0_16, %c0_17] : memref<1x1x128xf32, #tpu.memory_space<vmem>>, vector<1x1x128xf32>
    tpu.vector_store %arg6[%c0_15, %c0_16, %c0_17], %34 {strides = array<i32>} : memref<1x1x128xf32, #tpu.memory_space<vmem>>, vector<1x1x128xf32>,
    return
  }
  func.func @transform_0(%arg0: i32, %arg1: memref<2x8xi32, #tpu.memory_space<smem>>, %arg2: memref<2x8xi32, #tpu.memory_space<smem>>, %arg3: memref<2x8xi32, #tpu.memory_space<smem>>) -> (i32, i32, i32) {
    %c0_i32 = arith.constant 0 : i32
    %c0_i32_0 = arith.constant 0 : i32
    %c0_i32_1 = arith.constant 0 : i32
    return %arg0, %c0_i32, %c0_i32_0 : i32, i32, i32
  }
  func.func @transform_1(%arg0: i32, %arg1: memref<2x8xi32, #tpu.memory_space<smem>>, %arg2: memref<2x8xi32, #tpu.memory_space<smem>>, %arg3: memref<2x8xi32, #tpu.memory_space<smem>>) -> (i32, i32, i32) {
    %c0_i32 = arith.constant 0 : i32
    %c0_i32_0 = arith.constant 0 : i32
    %c0_i32_1 = arith.constant 0 : i32
    return %arg0, %c0_i32, %c0_i32_0 : i32, i32, i32
  }
  func.func @transform_2(%arg0: i32, %arg1: memref<2x8xi32, #tpu.memory_space<smem>>, %arg2: memref<2x8xi32, #tpu.memory_space<smem>>, %arg3: memref<2x8xi32, #tpu.memory_space<smem>>) -> (i32, i32, i32) {
    %c0_i32 = arith.constant 0 : i32
    %c0_i32_0 = arith.constant 0 : i32
    %c0_i32_1 = arith.constant 0 : i32
    return %arg0, %c0_i32, %c0_i32_0 : i32, i32, i32
  }
}

</mosaic_0001>

<bundles_post_ra>
// kernel: _pml_call.1
= control target key start
LH: loop header
LB: loop body
LE: loop exit
PB: predicated region body
PF: predicated region fallthrough
CT: control target
= control target key end

     0   :  { %s606_s18 = smov [#allocation6]   ;;  %s607_s21 = smov [#allocation7]   ;;  %s832_s0 = inlined_call_operand.hbm [shape: s32[2,8], index: 0, kind: input, shape index: {}]   ;;  %s833_s3 = inlined_call_operand.hbm [shape: f32[2,16,32], index: 3, kind: input, shape index: {}]   ;;  %s834_s4 = inlined_call_operand.hbm [shape: f32[2,16,32], index: 4, kind: input, shape index: {}]   ;;  %s835_s5 = inlined_call_operand.vmem [shape: f32[2,1,128], index: 5, kind: output, shape index: {}]   ;;  %s836_s1 = inlined_call_operand.hbm [shape: s32[2,8], index: 1, kind: input, shape index: {}]   ;;  %s837_s2 = inlined_call_operand.vmem [shape: s32[2,8], index: 2, kind: input, shape index: {}]  }
   0x1   :  { %11 = dma.hbm_to_smem %s832_s0, 32, %s606_s18, [#allocation5] }
   0x2   :  { %13 = dma.hbm_to_smem %s836_s1, 32, %s607_s21, [#allocation5] }
   0x3   :  { %s14_s26 = sshll.u32 %s837_s2, 4  ;;  %s15_s26 = int_to_ptr.vmem [resolvable:$true] %s14_s26 }
   0x4   :  { %s488_s27 = scalar_lea.vmem %s15_s26, 32  ;;  %p493_p1 = scmp.lt.s32.totalorder %s15_s26, %s15_s26 }
   0x5   :  { %p489_p0 = scmp.ne.s32.totalorder %s15_s26, %s488_s27  ;;  %p494_p2 = scmp.lt.s32.totalorder %s488_s27, %s488_s27 }
   0x7   :  { %p495_p3 = por %p494_p2, %p493_p1 }
   0x9   :  { %p496_p4 = pnand %p495_p3, %p489_p0 }
   0xb   :  { %499 = shalt.err (!%p496_p4)  }
   0xc   :  { %s608_s28 = smov [#allocation8]  }
   0xd   :  { %17 = dma.vmem_to_smem %s15_s26, 32, %s608_s28, [#allocation5] }
   0xe   :  { %576 = dma.done.wait [#allocation5], 96 }
   0xf   :  { %577 = vsyncadd [#allocation5], 4294967200 }
  0x10   :  { %19 = sfence }
  0x11   :  { %20 = vsyncpa [#allocation10], 0 }
  0x12   :  { %22 = vsyncpa [#allocation10 + $0x1], 0 }
  0x13   :  { %23 = vsyncpa [#allocation12], 0 }
  0x14   :  { %25 = vsyncpa [#allocation12 + $0x1], 0  ;;  %s652_s0 = smov 0   ;;  %s654_s1 = smov 0  }
  0x15   :  { %s656_s2 = smov 0   ;;  %s658_s29 = smov 0  }
  0x16 LB: > { %s671_s30 = sadd.s32 4294967295, %s600_s29   ;;  %s674_s6 = sadd.s32 1, %s600_s29   ;;  %s600_s29 = sphi %s658_s29, %s847_s29   ;;  %s596_s2 = sphi %s656_s2, %s846_s2   ;;  %s592_s1 = sphi %s654_s1, %s845_s1   ;;  %s588_s0 = sphi %s652_s0, %s844_s0  }
  0x17   : > { %s35_s7 = ssub.s32 %s600_s29, %s674_s6  ;;  %s38_s8 = sadd.s32 1, %s596_s2 }
  0x18   : > { %p36_p5 = scmp.eq.s32.totalorder %s35_s7, 0  ;;  %p45_p6 = scmp.ne.s32.totalorder %s596_s2, %s592_s1 }
  0x19   : > { %p46_p7 = scmp.eq.s32.totalorder %s600_s29, 0  ;;  %p51_p8 = scmp.ne.s32.totalorder %s592_s1, %s588_s0 }
  0x1a   : > { %s684_s9 = scalar_select %p36_p5, %s596_s2, %s38_s8  }
  0x1b   : > { %p47_p9 = por %p46_p7, %p45_p6  ;;  %p52_p10 = scmp.eq.s32.totalorder %s671_s30, 0 }
  0x1c   : > { %p418_p11 = scmp.lt.s32.totalorder %s600_s29, 2  ;;  %s693_s11 = sand.u32 1, %s596_s2  }
  0x1d   : > { %p688_p12 = por %p52_p10, %p51_p8  ;;  %s391_s12 = sshll.u32 %s693_s11, 4 }
  0x1e   : > { %s403_s13 = sshll.u32 %s600_s29, 8  ;;  %s131_s17 = scalar_lea.vmem [#allocation9], %s391_s12 }
  0x1f   : > { %s839_s10 = scalar_select %p688_p12, 1, 0 }
  0x20   : > { %s702_s16 = scalar_lea.hbm %s833_s3, %s403_s13  ;;  %s138_s18 = sshll.u32 %s131_s17, 4  ;;  %s706_s18 = int_to_ptr.vmem [resolvable:$true] %s138_s18 }
  0x21   : > { %p708_p13 = pnand %p418_p11, %p47_p9  ;;  %s128_s20 = scalar_lea.sflag [#allocation10], %s693_s11 }
  0x22   : > { %s500_s21 = scalar_lea.hbm %s702_s16, 256  ;;  %s505_s24 = scalar_lea.hbm %s833_s3, 512 }
  0x23   : > { %p501_p1 = scmp.ne.s32.totalorder %s702_s16, %s500_s21  ;;  %p502_p2 = pneg %p708_p13 }
  0x24   : > { %p506_p5 = scmp.lt.s32.totalorder %s702_s16, %s833_s3  ;;  %p507_p6 = scmp.lt.s32.totalorder %s505_s24, %s500_s21 }
  0x25   : > { %p503_p3 = pnand %p502_p2, %p501_p1 }
  0x26   : > { %p508_p7 = por %p507_p6, %p506_p5 }
  0x27   : > { %p504_p4 = pneg %p503_p3 }
  0x29   : > { %p509_p8 = pnand %p508_p7, %p504_p4 }
  0x2b   : > { %512 = shalt.err (!%p509_p8)
}
  0x2c   : > { %s513_s27 = scalar_lea.vmem %s706_s18, 256  ;;  %s609_s28 = smov [#allocation9]  }
  0x2d   : > { %p514_p9 = scmp.ne.s32.totalorder %s706_s18, %s513_s27  ;;  %s518_s0 = sshll.u32 %s609_s28, 4  ;;  %s519_s0 = int_to_ptr.vmem [resolvable:$false] %s518_s0 }
  0x2e   : > { %s520_s7 = scalar_lea.vmem %s519_s0, 512  ;;  %p521_p1 = scmp.lt.s32.totalorder %s706_s18, %s519_s0 }
  0x2f   : > { %p516_p10 = pnand %p514_p9, %p502_p2  ;;  %p522_p3 = scmp.lt.s32.totalorder %s520_s7, %s513_s27 }
  0x31   : > { %p517_p11 = pneg %p516_p10  ;;  %p523_p0 = por %p522_p3, %p521_p1 }
  0x33   : > { %p524_p5 = pnand %p523_p0, %p517_p11 }
  0x35   : > { %527 = shalt.err (!%p524_p5)
}
  0x36   : > { %s610_s8 = smov 128   ;;  %s611_s14 = smov 8  }
  0x37   : > { %414 = dma.hbm_to_vmem [thread:$0]  (!%p708_p13), %s702_s16, 256, %s706_s18, %s128_s20, %s610_s8, %s610_s8, %s611_s14  }
  0x38   : > { %p167_p0 = scmp.lt.s32.totalorder %s600_s29, 3  ;;  %s749_s21 = scalar_lea.hbm %s834_s4, %s403_s13 }
  0x39   : > { %p841_p4 = scmp.ge.s32.totalorder %s600_s29, 1  ;;  %s152_s23 = scalar_lea.vmem [#allocation11], %s391_s12 }
  0x3a   : > { %s159_s24 = sshll.u32 %s152_s23, 4  ;;  %s149_s16 = scalar_lea.sflag [#allocation12], %s693_s11  ;;  %s759_s24 = int_to_ptr.vmem [resolvable:$true] %s159_s24 }
  0x3b   : > { %p753_p6 = pnand %p841_p4, %p167_p0  ;;  %s528_s18 = scalar_lea.hbm %s749_s21, 256 }
  0x3c   : > { %p529_p7 = scmp.ne.s32.totalorder %s749_s21, %s528_s18  ;;  %s533_s20 = scalar_lea.hbm %s834_s4, 512 }
  0x3d   : > { %p534_p10 = scmp.lt.s32.totalorder %s749_s21, %s834_s4  ;;  %p535_p11 = scmp.lt.s32.totalorder %s533_s20, %s528_s18 }
  0x3e   : > { %p531_p8 = pnand %p529_p7, %p502_p2 }
  0x3f   : > { %p536_p1 = por %p535_p11, %p534_p10 }
  0x40   : > { %p532_p9 = pneg %p531_p8 }
  0x42   : > { %p537_p3 = pnand %p536_p1, %p532_p9 }
  0x44   : > { %540 = shalt.err (!%p537_p3)
}
  0x45   : > { %s541_s11 = scalar_lea.vmem %s759_s24, 256  ;;  %s612_s12 = smov [#allocation11]  }
  0x46   : > { %p542_p5 = scmp.ne.s32.totalorder %s759_s24, %s541_s11  ;;  %s546_s27 = sshll.u32 %s612_s12, 4  ;;  %s547_s27 = int_to_ptr.vmem [resolvable:$false] %s546_s27 }
  0x47   : > { %s548_s28 = scalar_lea.vmem %s547_s27, 512  ;;  %p549_p7 = scmp.lt.s32.totalorder %s759_s24, %s547_s27 }
  0x48   : > { %p544_p0 = pnand %p542_p5, %p502_p2  ;;  %p550_p8 = scmp.lt.s32.totalorder %s548_s28, %s541_s11 }
  0x4a   : > { %p545_p4 = pneg %p544_p0  ;;  %p551_p12 = por %p550_p8, %p549_p7 }
  0x4c   : > { %p552_p10 = pnand %p551_p12, %p545_p4 }
  0x4e   : > { %555 = shalt.err (!%p552_p10)
}
  0x4f   : > { %417 = dma.hbm_to_vmem [thread:$0]  (!%p708_p13), %s749_s21, 256, %s759_s24, %s149_s16, %s610_s8, %s610_s8, %s611_s14  }
  0x50   : > { %171 = sbr.rel (%p753_p6) target bundleno = 508 (0x1fc), region = 28  ;;  %s173_s0 = sand.u32 (!%p753_p6), 1, %s592_s1  }
  0x51   : > { %s398_s7 = sshll.u32 (!%p753_p6), %s173_s0, 4  ;;  %s174_s15 = scalar_lea.sflag (!%p753_p6), [#allocation10], %s173_s0 }
  0x52   : > { %s790_s17 = scalar_lea.vmem (!%p753_p6), [#allocation9], %s398_s7  ;;  %p843_p12 = scmp.ne.s32.totalorder (!%p753_p6), %s839_s10, 0 }
  0x55   : > { %579 = dma.done.wait (%p843_p12), %s174_s15, 256  }
  0x56   : > { %581 = vsyncadd (%p843_p12), %s174_s15, 4294967040  ;;  %s183_s19 = scalar_lea.sflag [#allocation12], %s173_s0  ;;  %s796_s23 = scalar_lea.vmem [#allocation11], %s398_s7 }
  0x57   : > { %583 = dma.done.wait (%p843_p12), %s183_s19, 256  }
  0x58   : > { %585 = vsyncadd (%p843_p12), %s183_s19, 4294967040  ;;  %p210_p13 = scmp.lt.s32.totalorder %s671_s30, 1  ;;  %s602_s24 = smov 0  }
  0x5a   : > { %s804_s8 = scalar_select %p210_p13, %s671_s30, 1 }
  0x5c   : > { %s212_s22 = scalar_lea.vmem %s835_s5, %s804_s8 }
  0x5d LB: >> { %s219_s10 = sshra.s32 %s604_s24, 7  ;;  %s224_s16 = sand.u32 127, %s604_s24  ;;  %vm230_vm0 = vcmask 253952   ;;  %s604_s24 = sphi %s602_s24, %s218_s24  }
  0x5e   : >> { %s221_s18 = sadd.s32 %s671_s30, %s219_s10  ;;  %s229_s27 = scalar_lea.vmem [#allocation2], %s604_s24 }
  0x5f   : >> { %s400_s29 = sshll.u32 %s221_s18, 7  ;;  %s235_s0 = scalar_lea.vmem [#allocation3], %s604_s24 }
  0x60   : >> { %s225_s13 = sadd.s32 %s400_s29, %s224_s16  ;;  %s240_s7 = scalar_lea.vmem [#allocation4], %s604_s24 }
  0x61   : >> { %s226_s20 = sld [smem:[#allocation6 + %s225_s13]]  ;;  %s218_s24 = sadd.s32 1, %s604_s24  }
  0x62   : >> { %s232_s25 = sld [smem:[#allocation7 + %s225_s13]]  ;;  %p215_p2 = scmp.ge.s32.totalorder %s218_s24, 8  }
  0x63   : >> { %s237_s26 = sld [smem:[#allocation8 + %s225_s13]]  ;;  %vm250_vm1 = vcmask (%p215_p2), 261120   ;;  %vm281_vm6 = vcmask (%p215_p2), 7168  }
  0x67   : >> { %s227_s11 = scalar_lea.vmem %s790_s17, %s226_s20 [#allocation9]  ;;  %217 = sbr.rel (!%p215_p2) target bundleno = 93 (0x5d), region = 94 }
  0x68   : >> { %v228_v0 = vld [vmem:[%s227_s11] sm:$0x1]  ;;  %s233_s12 = scalar_lea.vmem %s796_s23, %s232_s25 [#allocation11] }
  0x69   : >> { %231 = vst.msk [vmem:[%s229_s27] sm:$0x1] %vm230_vm0, %v228_v0  ;;  %v234_v1 = vld [vmem:[%s233_s12] sm:$0x1]  ;;  %s238_s28 = scalar_lea.vmem %s796_s23, %s237_s26 [#allocation11] }
  0x6a   : >> { %236 = vst.msk [vmem:[%s235_s0] sm:$0x1] %vm230_vm0, %v234_v1  ;;  %v239_v2 = vld [vmem:[%s238_s28] sm:$0x1] }
  0x6b   : >> { %241 = vst.msk [vmem:[%s240_s7] sm:$0x1] %vm230_vm0, %v239_v2 }
  0x70   : > { %v242_v3 = vld [vmem:[#allocation2] sm:$0xff] }
  0x71   : > { %v243_v4 = vld [vmem:[#allocation3] sm:$0xff] }
  0x72   : > { %v246_v5 = vld [vmem:[#allocation4] sm:$0xff]  ;;  %v244_v6 = vsub.f32 %v242_v3, %v243_v4 }
  0x73   : > { %v247_v7 = vsub.f32 %v242_v3, %v246_v5 }
  0x74   : > { %v245_v8 = vadd.f32 1e-06, %v244_v6 }
  0x75   : > { %v248_v9 = vadd.f32 1e-06, %v247_v7 }
  0x76   : > { %v249_v10 = vmul.f32 %v245_v8, %v245_v8 }
  0x77   : > { %v261_v11 = vmul.f32 %v248_v9, %v248_v9 }
  0x78   : > { %v251_v12 = vsel %vm250_vm1, %v249_v10, 0.0 }
  0x79   : > { %252 = vadd.xlane.f32.xlu0 %v251_v12  ;;  %v262_v13 = vsel %vm250_vm1, %v261_v11, 0.0 }
  0x7d   : > { %263 = vadd.xlane.f32.xlu0 %v262_v13 }
 0x102   : > { %v253_v14 = vpop.xlane.xlu0 %252 }
 0x103   : > { %464 = vrsqrt.f32 %v253_v14  ;;  %vm256_vm2 = vcmp.eq.f32.partialorder %v253_v14, inf  ;;  %v259_v18 = vand.u32 2147483648, %v253_v14  ;;  %vm258_vm3 = vcmp.eq.f32.partialorder %v253_v14, 0.0 }
 0x106   : > { %v264_v15 = vpop.xlane.xlu0 %263 }
 0x107   : > { %466 = vrsqrt.f32 %v264_v15  ;;  %vm267_vm4 = vcmp.eq.f32.partialorder %v264_v15, inf  ;;  %v270_v24 = vand.u32 2147483648, %v264_v15  ;;  %vm269_vm5 = vcmp.eq.f32.partialorder %v264_v15, 0.0 }
 0x110   : > { %v465_v16 = vpop.eup %464 }
 0x111   : > { %v255_v17 = vmul.f32 %v465_v16, %v253_v14 }
 0x113   : > { %v257_v19 = vsel %vm256_vm2, %v253_v14, %v255_v17 }
 0x114   : > { %v467_v20 = vpop.eup %466  ;;  %v260_v21 = vsel %vm258_vm3, %v259_v18, %v257_v19 }
 0x115   : > { %v266_v22 = vmul.f32 %v467_v20, %v264_v15  ;;  %v272_v23 = vsub.f32 0.0, %v260_v21 }
 0x117   : > { %v268_v25 = vsel %vm267_vm4, %v264_v15, %v266_v22  ;;  %v273_v26 = vmul.f32 1.442695, %v272_v23 }
 0x118   : > { %v271_v27 = vsel %vm269_vm5, %v270_v24, %v268_v25 }
 0x119   : > { %v276_v28 = vsub.f32 0.0, %v271_v27  ;;  %468 = vpow2.f32 %v273_v26 }
 0x11b   : > { %v277_v29 = vmul.f32 1.442695, %v276_v28 }
 0x11d   : > { %470 = vpow2.f32 %v277_v29 }
 0x126   : > { %v469_v30 = vpop.eup %468 }
 0x127   : > { %v275_v31 = vsub.f32 0.01, %v469_v30 }
 0x12a   : > { %v471_v32 = vpop.eup %470 }
 0x12b   : > { %v279_v33 = vadd.f32 %v471_v32, %v275_v31 }
 0x12d   : > { %v280_v34 = vmax.f32 %v279_v33, 0.0 }
 0x12f   : > { %v282_v35 = vsel %vm281_vm6, %v280_v34, 0.0 }
 0x130   : > { %283 = vadd.xlane.f32.xlu1 %v282_v35 }
 0x1b9   : > { %v284_v36 = vpop.xlane.xlu1 %283 }
 0x1ba   : > { %v285_v37 = vrot.slane %v284_v36, 4 }
 0x1bc   : > { %v286_v38 = vadd.f32 %v285_v37, %v284_v36 }
 0x1be   : > { %v287_v39 = vrot.slane %v286_v38, 2 }
 0x1c0   : > { %v288_v40 = vadd.f32 %v287_v39, %v286_v38 }
 0x1c2   : > { %v289_v41 = vrot.slane %v288_v40, 1 }
 0x1c4   : > { %v290_v42 = vadd.f32 %v289_v41, %v288_v40 }
 0x1c6   : > { %405 = vpush %v290_v42 }
 0x1f7   : > { %s406_s30 = spop %405 }
 0x1f8   : > { %s292_s15 = smul.f32 0.1, %s406_s30 }
 0x1fa   : > { %v293_v43 = vstv %s292_s15 }
 0x1fb   : > { %294 = vst [vmem:[%s212_s22] sm:$0x1] %v293_v43 }
 0x1fc PF: > { %p28_p6 = scmp.ge.s32.totalorder %s674_s6, 4   ;;  %s844_s0 = smov %s592_s1 }
 0x1fd   : > { %s845_s1 = smov %s596_s2  ;;  %s846_s2 = smov %s684_s9 }
 0x1fe   : > { %s847_s29 = smov %s674_s6  ;;  %30 = sbr.rel (!%p28_p6) target bundleno = 22 (0x16), region = 105 }
 0x203   :  { %312 = vsyncpa [#allocation10], 1 }
 0x204   :  { %314 = vsyncpa [#allocation10 + $0x1], 1 }
 0x205   :  { %315 = vsyncpa [#allocation12], 1 }
 0x206   :  { %317 = vsyncpa [#allocation12 + $0x1], 1 }

</bundles_post_ra>
